<compile_context>
chip_gen: v6e
topology: v6e:2x2x1
jax: 0.10.0
libtpu: 0.0.40
codegen_flags: <defaults>
</compile_context>

<pallas_src>
import functools
import math
from typing import List, Optional, Sequence

import jax
import jax.numpy as jnp
from jax.experimental import pallas as pl
from jax.experimental.pallas import tpu as pltpu


_TARGET_BLOCK_BYTES = 4 * 1024 * 1024     # per-block upper bound (before VMEM cap)
_SMALL_BYPASS_BYTES = 1 * 1024 * 1024     # sub-MiB inputs: XLA slices beat dispatch


def _sublane_pack(itemsize: int) -> int:
    # f32 -> 8, bf16/f16 -> 16, int8/fp8 -> 32 sublanes per packed (x,128) tile.
    return 8 * max(1, 4 // max(1, itemsize))


@functools.lru_cache(maxsize=None)
def _vmem_budget_bytes() -> int:
    """Per-generation scoped VMEM budget (~half of physical VMEM)."""
    cap = 64 * 1024 * 1024
    try:
        info = pltpu.get_tpu_info()
        cap = int(getattr(info, "vmem_capacity_bytes", cap)) or cap
    except Exception:
        pass
    # 128 MiB physical (v5e/v6e) -> 64 MiB budget; 64 MiB physical (v7x) -> 32 MiB.
    return max(16 * 1024 * 1024, min(cap // 2, 96 * 1024 * 1024))


def _torch_split_sizes(length: int, num_splits: int, split: Optional[List[int]]):
    """Section sizes with torch.split semantics (matches the nn.Module spec)."""
    if split is not None:
        sizes = [int(s) for s in split]
        if sum(sizes) != length:
            raise ValueError("split sections must sum to the axis length")
        return sizes
    split_size = length // num_splits
    if split_size <= 0:
        raise ValueError("num_splits larger than the split-axis length")
    n_full = length // split_size
    sizes = [split_size] * n_full
    rem = length - split_size * n_full
    if rem:
        sizes.append(rem)
    return sizes


def _largest_divisor_leq(n: int, limit: int) -> int:
    """Largest divisor of n that is <= limit (n >= 1, limit >= 1)."""
    if n <= limit:
        return n
    best = 1
    i = 1
    while i * i <= n:
        if n % i == 0:
            lo, hi = i, n // i
            if lo <= limit and lo > best:
                best = lo
            if hi <= limit and hi > best:
                best = hi
        i += 1
    return best


def _max_lane_block(outer: int, itemsize: int, block_byte_cap: int) -> int:
    """Widest lane block (multiple of 128) such that a minimum-height block
    still respects the per-block byte budget."""
    rows = max(1, min(_sublane_pack(itemsize), outer))
    ml = block_byte_cap // max(1, rows * itemsize)
    return max(128, (ml // 128) * 128)


def _choose_lane_block(col_starts: Sequence[int], width: int,
                       max_lanes: int) -> Optional[int]:
    """Largest multiple-of-128 divisor of gcd(width, *col_starts) that is
    <= max_lanes, or None if the boundaries are not 128-lane alignable."""
    g = width
    for c in col_starts:
        g = math.gcd(g, c)
    if g <= 0 or g % 128 != 0:
        return None
    limit = max(1, max_lanes // 128)
    return 128 * _largest_divisor_leq(g // 128, limit)


def _choose_rows(outer: int, lane_width: int, itemsize: int,
                 block_byte_cap: int) -> int:
    """Rows per block: full dim if small, else a multiple of the sublane pack
    sized so each pipelined block moves ~block_byte_cap bytes."""
    pack = _sublane_pack(itemsize)
    if outer <= pack:
        return outer
    row_bytes = max(1, lane_width * itemsize)
    want = max(pack, (block_byte_cap // row_bytes // pack) * pack)
    return min(want, outer)


def _ensure_two_blocks(outer: int, tm: int, lane_block: int, width: int,
                       itemsize: int):
    """Guarantee >= 2 grid blocks where possible so both v7x TensorCores can
    drive HBM (neutral on single-TC v5e/v6e)."""
    n_rows = -(-outer // tm)
    n_lanes = width // lane_block
    if n_rows * n_lanes >= 2:
        return tm, lane_block
    if lane_block % 256 == 0:
        # Halving keeps it a 128-multiple and it still divides every offset.
        return tm, lane_block // 2
    pack = _sublane_pack(itemsize)
    half = ((tm // 2) // pack) * pack
    if pack <= half < outer:
        return half, lane_block
    return tm, lane_block


def _copy_sections(x2: jax.Array, col_starts: Sequence[int], width: int,
                   vmem_budget: int):
    """Fast path: copy n equal-width column sections, each section's HBM window
    DMA'd straight into its own output (one HBM read + one HBM write per byte).
    Fused into a single pallas_call sharing one software pipeline."""
    outer = x2.shape[0]
    n = len(col_starts)
    itemsize = x2.dtype.itemsize

    # Per section per step: 1 input + 1 output block, double-buffered -> ~4x
    # block bytes.  Keep the fused total at <= ~half the VMEM budget.
    block_cap = max(128 * 1024, min(_TARGET_BLOCK_BYTES, vmem_budget // (8 * n)))

    lane_block = _choose_lane_block(
        col_starts, width, _max_lane_block(outer, itemsize, block_cap))
    if lane_block is None:  # caller guarantees alignment; defensive only
        raise ValueError("section boundaries are not 128-lane alignable")
    tm = _choose_rows(outer, lane_block, itemsize, block_cap)
    tm, lane_block = _ensure_two_blocks(outer, tm, lane_block, width, itemsize)

    grid = (pl.cdiv(outer, tm), width // lane_block)
    col_blocks = [c // lane_block for c in col_starts]

    def kernel(*refs):
        # Pure pass-through: the BlockSpec windows already implement the split.
        for k in range(n):
            refs[n + k][...] = refs[k][...]

    in_specs = [pl.BlockSpec((tm, lane_block), lambda i, j, c0=c0: (i, c0 + j))
                for c0 in col_blocks]
    out_specs = tuple(pl.BlockSpec((tm, lane_block), lambda i, j: (i, j))
                      for _ in range(n))
    out_shape = tuple(jax.ShapeDtypeStruct((outer, width), x2.dtype)
                      for _ in range(n))

    outs = pl.pallas_call(
        kernel,
        out_shape=out_shape,
        grid=grid,
        in_specs=in_specs,
        out_specs=out_specs,
        compiler_params=pltpu.CompilerParams(
            dimension_semantics=("parallel", "parallel"),
            vmem_limit_bytes=vmem_budget),
    )(*([x2] * n))
    if not isinstance(outs, (tuple, list)):
        outs = (outs,)
    return tuple(outs)


def _split_fallback(x2: jax.Array, col_starts, widths, vmem_budget: int):
    """Sections whose column offsets/widths are not whole 128-lane blocks:
    stage lane-dense (tm, total) row slabs and write static lane slices."""
    outer, total = x2.shape
    itemsize = x2.dtype.itemsize
    pack = _sublane_pack(itemsize)
    col_starts = tuple(int(c) for c in col_starts)
    widths = tuple(int(w) for w in widths)

    # Per step: one (tm, total) input slab + the output slices, double-buffered
    # -> ~4 * tm * total * itemsize.  Guard the budget (v7x: 64 MiB VMEM).
    cap = min(_TARGET_BLOCK_BYTES, vmem_budget // 8)
    row_bytes = max(1, total * itemsize)
    max_rows = cap // row_bytes
    if max_rows >= outer:
        tm = outer
    elif max_rows >= pack:
        tm = (max_rows // pack) * pack
    else:
        # Even a minimum-height slab would exceed the budget: let XLA slice it.
        # TODO(synk): add a 128-aligned column-group grid axis so very wide
        # rows stay pipelined instead of falling back to XLA.
        return tuple(x2[:, c:c + w] for c, w in zip(col_starts, widths))

    grid = (pl.cdiv(outer, tm),)

    def kernel(x_ref, *out_refs):
        for o_ref, c, w in zip(out_refs, col_starts, widths):
            # TODO(synk): sections narrower than 128 lanes lower to masked
            # vst.msk stores; a wrapper-side lane-dense repack would recover
            # the lost store bandwidth.
            o_ref[...] = x_ref[:, c:c + w]

    out_shape = tuple(jax.ShapeDtypeStruct((outer, w), x2.dtype) for w in widths)
    out_specs = tuple(pl.BlockSpec((tm, w), lambda i: (i, 0)) for w in widths)
    outs = pl.pallas_call(
        kernel,
        out_shape=out_shape,
        grid=grid,
        in_specs=[pl.BlockSpec((tm, total), lambda i: (i, 0))],
        out_specs=out_specs,
        compiler_params=pltpu.CompilerParams(
            dimension_semantics=("parallel",),
            vmem_limit_bytes=vmem_budget),
    )(x2)
    if not isinstance(outs, (tuple, list)):
        outs = (outs,)
    return tuple(outs)


def onnx_split(x: jax.Array,
               num_splits: int,
               axis: int = 0,
               split: Optional[List[int]] = None):
    """Reproduces OnnxSplit.forward (== torch.split) semantics."""
    ndim = x.ndim
    axis = axis % ndim
    L = x.shape[axis]

    sizes = _torch_split_sizes(L, num_splits, split)
    offsets, acc = [], 0
    for s in sizes:
        offsets.append(acc)
        acc += s

    # Canonical lane-dense 2-D view: rows = prod(dims before axis),
    # columns = split-axis * prod(dims after axis); every section is a
    # contiguous column range of each row.
    outer = math.prod(x.shape[:axis])
    inner = math.prod(x.shape[axis + 1:])
    x2 = x.reshape(outer, L * inner)

    col_starts = [o * inner for o in offsets]
    widths = [s * inner for s in sizes]

    results_2d = [None] * len(sizes)
    total_bytes = x.size * x.dtype.itemsize
    degenerate = (outer == 0) or (L * inner == 0)

    if degenerate or total_bytes < _SMALL_BYPASS_BYTES:
        # Tiny / empty inputs: kernel dispatch overhead exceeds the copy time.
        for k, (c, w) in enumerate(zip(col_starts, widths)):
            results_2d[k] = x2[:, c:c + w]
    else:
        budget = _vmem_budget_bytes()
        nonzero = [k for k, w in enumerate(widths) if w > 0]

        # Zero-width sections carry no data: build them without a kernel.
        for k, w in enumerate(widths):
            if w == 0:
                results_2d[k] = x2[:, col_starts[k]:col_starts[k]]

        aligned = all(
            math.gcd(col_starts[k], widths[k]) % 128 == 0 for k in nonzero)

        if nonzero and aligned:
            nz_widths = {widths[k] for k in nonzero}
            if len(nz_widths) == 1:
                # Common equal-split case: one fused pallas_call for all sections.
                w = widths[nonzero[0]]
                outs = _copy_sections(
                    x2, [col_starts[k] for k in nonzero], w, budget)
                for k, o in zip(nonzero, outs):
                    results_2d[k] = o
            else:
                # Uneven sections: per-section direct-window copies.
                for k in nonzero:
                    results_2d[k] = _copy_sections(
                        x2, [col_starts[k]], widths[k], budget)[0]
        elif nonzero:
            outs = _split_fallback(
                x2,
                [col_starts[k] for k in nonzero],
                [widths[k] for k in nonzero],
                budget)
            for k, o in zip(nonzero, outs):
                results_2d[k] = o

    # Reshape each section back to the original rank (metadata-only).
    results = []
    for r2, s in zip(results_2d, sizes):
        new_shape = x.shape[:axis] + (s,) + x.shape[axis + 1:]
        results.append(r2.reshape(new_shape))
    return tuple(results)


if __name__ == "__main__":
    key = jax.random.PRNGKey(0)
    k1, k2, k3 = jax.random.split(key, 3)

    # Case 1: equal split along channels, big enough for the fused Pallas fast
    # path (one pallas_call, two windowed inputs + two outputs, >=2 lane blocks).
    x1 = jax.random.normal(k1, (16, 8, 32, 128), dtype=jnp.float32)   # 2 MiB
    outs1 = onnx_split(x1, num_splits=2, axis=1, split=None)
    outs1 = jax.block_until_ready(outs1)
    ref1 = jnp.split(x1, 2, axis=1)
    assert len(outs1) == 2
    for o, r in zip(outs1, ref1):
        assert o.shape == r.shape and o.dtype == r.dtype
        assert bool(jnp.array_equal(o, r))

    # Case 2: explicit uneven sections -> per-section direct-window copies.
    outs2 = onnx_split(x1, num_splits=2, axis=1, split=[2, 6])
    outs2 = jax.block_until_ready(outs2)
    ref2 = (x1[:, 0:2], x1[:, 2:8])
    for o, r in zip(outs2, ref2):
        assert o.shape == r.shape
        assert bool(jnp.array_equal(o, r))

    # Case 3: non-128-alignable boundaries (last-axis split) -> Pallas fallback
    # (lane-dense row slabs, static lane slices per section, VMEM-guarded).
    x3 = jax.random.normal(k2, (4096, 96), dtype=jnp.float32)          # 1.5 MiB
    outs3 = onnx_split(x3, num_splits=2, axis=-1, split=[48, 48])
    outs3 = jax.block_until_ready(outs3)
    ref3 = (x3[:, :48], x3[:, 48:])
    for o, r in zip(outs3, ref3):
        assert o.shape == r.shape
        assert bool(jnp.array_equal(o, r))

    # Case 4: small tensor (sub-MiB) -> XLA-slice bypass; also checks the
    # torch.split(split_size) remainder semantics (L=5, num_splits=2 -> 2,2,1).
    x4 = jax.random.normal(k3, (2, 5, 16, 16), dtype=jnp.float32)
    outs4 = onnx_split(x4, num_splits=2, axis=1, split=None)
    outs4 = jax.block_until_ready(outs4)
    ref4 = (x4[:, 0:2], x4[:, 2:4], x4[:, 4:5])
    assert len(outs4) == 3
    for o, r in zip(outs4, ref4):
        assert o.shape == r.shape
        assert bool(jnp.array_equal(o, r))

    print("KERNEL_OK")
</pallas_src>

<mosaic_0001>
module attributes {stable_mosaic.version = 11 : i64} {
  func.func @kernel(%arg0: i32, %arg1: i32, %arg2: memref<16x8192xf32, #tpu.memory_space<vmem>>, %arg3: memref<16x8192xf32, #tpu.memory_space<vmem>>, %arg4: memref<16x8192xf32, #tpu.memory_space<vmem>>, %arg5: memref<16x8192xf32, #tpu.memory_space<vmem>>) attributes {dimension_semantics = [#tpu.dimension_semantics<parallel>, #tpu.dimension_semantics<parallel>], iteration_bounds = array<i64: 1, 2>, scalar_prefetch = 0 : i64, scratch_operands = 0 : i64, tpu.core_type = #tpu.core_type<tc>, window_params = [{transform_indices = @transform_0, window_bounds = array<i64: 16, 8192>}, {transform_indices = @transform_1, window_bounds = array<i64: 16, 8192>}, {transform_indices = @transform_2, window_bounds = array<i64: 16, 8192>}, {transform_indices = @transform_3, window_bounds = array<i64: 16, 8192>}]} {
    %c0 = arith.constant 0 : index
    %c0_0 = arith.constant 0 : index
    %0 = vector.load %arg2[%c0, %c0_0] : memref<16x8192xf32, #tpu.memory_space<vmem>>, vector<16x8192xf32>
    %c0_1 = arith.constant 0 : index
    %c0_2 = arith.constant 0 : index
    %1 = vector.load %arg4[%c0_1, %c0_2] : memref<16x8192xf32, #tpu.memory_space<vmem>>, vector<16x8192xf32>
    tpu.vector_store %arg4[%c0_1, %c0_2], %0 {strides = array<i32>} : memref<16x8192xf32, #tpu.memory_space<vmem>>, vector<16x8192xf32>,
    %c0_3 = arith.constant 0 : index
    %c0_4 = arith.constant 0 : index
    %2 = vector.load %arg3[%c0_3, %c0_4] : memref<16x8192xf32, #tpu.memory_space<vmem>>, vector<16x8192xf32>
    %c0_5 = arith.constant 0 : index
    %c0_6 = arith.constant 0 : index
    %3 = vector.load %arg5[%c0_5, %c0_6] : memref<16x8192xf32, #tpu.memory_space<vmem>>, vector<16x8192xf32>
    tpu.vector_store %arg5[%c0_5, %c0_6], %2 {strides = array<i32>} : memref<16x8192xf32, #tpu.memory_space<vmem>>, vector<16x8192xf32>,
    return
  }
  func.func @transform_0(%arg0: i32, %arg1: i32) -> (i32, i32) {
    %c0_i32 = arith.constant 0 : i32
    %0 = arith.addi %c0_i32, %arg1 : i32
    %c0_i32_0 = arith.constant 0 : i32
    return %arg0, %0 : i32, i32
  }
  func.func @transform_1(%arg0: i32, %arg1: i32) -> (i32, i32) {
    %c2_i32 = arith.constant 2 : i32
    %0 = arith.addi %c2_i32, %arg1 : i32
    %c0_i32 = arith.constant 0 : i32
    return %arg0, %0 : i32, i32
  }
  func.func @transform_2(%arg0: i32, %arg1: i32) -> (i32, i32) {
    %c0_i32 = arith.constant 0 : i32
    return %arg0, %arg1 : i32, i32
  }
  func.func @transform_3(%arg0: i32, %arg1: i32) -> (i32, i32) {
    %c0_i32 = arith.constant 0 : i32
    return %arg0, %arg1 : i32, i32
  }
}

</mosaic_0001>

<bundles_post_ra>
// kernel: tpu_custom_call.1
= control target key start
LH: loop header
LB: loop body
LE: loop exit
PB: predicated region body
PF: predicated region fallthrough
CT: control target
= control target key end

     0   :  { %s2152_s0 = inlined_call_operand.hbm [shape: f32[16,32768], index: 0, kind: input, shape index: {}]   ;;  %s2153_s1 = inlined_call_operand.hbm [shape: f32[16,32768], index: 1, kind: input, shape index: {}]   ;;  %s2154_s2 = inlined_call_operand.hbm [shape: f32[16,16384], index: 2, kind: output, shape index: {0}]   ;;  %s2155_s3 = inlined_call_operand.hbm [shape: f32[16,16384], index: 3, kind: output, shape index: {1}]  }
   0x1   :  { %2158 = sst [smem:[#allocation16_spill]] %s2152_s0 }
   0x2   :  { %9 = vsyncpa [#allocation3], 0 }
   0x3   :  { %11 = vsyncpa [#allocation3 + $0x1], 0 }
   0x4   :  { %12 = vsyncpa [#allocation6], 0 }
   0x5   :  { %14 = vsyncpa [#allocation6 + $0x1], 0 }
   0x6   :  { %15 = vsyncpa [#allocation4], 0 }
   0x7   :  { %17 = vsyncpa [#allocation4 + $0x1], 0 }
   0x8   :  { %18 = vsyncpa [#allocation9], 0 }
   0x9   :  { %20 = vsyncpa [#allocation9 + $0x1], 0  ;;  %s1336_s12 = smov 0   ;;  %s1338_s13 = smov 0  }
   0xa   :  { %s1340_s14 = smov 0   ;;  %s1342_s15 = smov 0  }
   0xb   :  { %s1344_s16 = smov 0   ;;  %s1346_s17 = smov 0  }
   0xc   :  { %s1348_s18 = smov 0   ;;  %s1350_s19 = smov 0  }
   0xd   :  { %s1352_s20 = smov 0  }
   0xe LB: > { %s980_s21 = sadd.s32 4294967295, %s1304_s20   ;;  %s981_s22 = sadd.s32 4294967294, %s1304_s20   ;;  %s1304_s20 = sphi %s1352_s20, %s26_s20   ;;  %s1300_s19 = sphi %s1350_s19, %s2184_s19   ;;  %s1296_s18 = sphi %s1348_s18, %s2183_s18   ;;  %s1292_s17 = sphi %s1346_s17, %s2182_s17   ;;  %s1288_s16 = sphi %s1344_s16, %s2181_s16   ;;  %s1284_s15 = sphi %s1342_s15, %s2180_s15   ;;  %s1280_s14 = sphi %s1340_s14, %s2179_s14   ;;  %s1276_s13 = sphi %s1338_s13, %s2178_s13   ;;  %s1272_s12 = sphi %s1336_s12, %s2177_s12  }
   0xf   : > { %s35_s23 = sadd.s32 1, %s1300_s19  ;;  %s47_s24 = sadd.s32 1, %s1292_s17 }
  0x10   : > { %p36_p0 = scmp.ge.s32.totalorder %s35_s23, 2  ;;  %p54_p1 = scmp.ne.s32.totalorder %s1292_s17, %s1288_s16 }
  0x11   : > { %p2157_p2 = scmp.eq.s32.totalorder %s1304_s20, 0  ;;  %p60_p3 = scmp.ne.s32.totalorder %s1288_s16, %s1284_s15 }
  0x12   : > { %s2186_s23 = smov (%p36_p0, %s35_s23), 0  ;;  %p1401_p5 = scmp.eq.s32.totalorder %s980_s21, 0 }
  0x13   : > { %2159 = sst [smem:[#allocation14_spill]] %s2186_s23  ;;  %p1397_p4 = por %p2157_p2, %p54_p1 }
  0x14   : > { %s43_s27 = ssub.s32 %s1300_s19, %s2186_s23  ;;  %s70_s28 = sadd.s32 2, %s1300_s19 }
  0x15   : > { %p45_p6 = scmp.eq.s32.totalorder %s43_s27, 0  ;;  %p1413_p7 = por %p1401_p5, %p60_p3 }
  0x16   : > { %s71_s30 = sadd.s32 2, %s2186_s23  ;;  %p116_p8 = scmp.eq.s32.totalorder %s980_s21, 1 }
  0x17   : > { %s1419_s4 = scalar_select %p45_p6, %s1292_s17, %s47_s24  }
  0x18   : > { %s1421_s5 = ssub.s32 %s70_s28, %s71_s30  ;;  %p1426_p9 = por %p116_p8, %p54_p1 }
  0x19   : > { %2163 = sst [smem:[#allocation15_spill]] %s1419_s4  ;;  %p122_p11 = scmp.eq.s32.totalorder %s981_s22, 1 }
  0x1a   : > { %p1029_p13 = scmp.lt.s32.totalorder %s1304_s20, 2  ;;  %s170_s8 = sand.u32 1, %s1292_s17  }
  0x1b   : > { %p1436_p0 = por %p122_p11, %p60_p3  ;;  %s984_s9 = sshll.u32 %s170_s8, 10 }
  0x1c   : > { %s1003_s10 = sshll.u32 %s1300_s19, 13  ;;  %s2166_s0 = sld [smem:[#allocation16_spill]] }
  0x1d   : > { %s2165_s7 = scalar_select %p1436_p0, 1, 0 }
  0x1e   : > { %s174_s27 = scalar_lea.vmem [#allocation2], %s984_s9  ;;  %p1451_p1 = pnand %p1029_p13, %p1397_p4 }
  0x1f   : > { %s184_s28 = sshll.u32 %s174_s27, 4  ;;  %s171_s30 = scalar_lea.sflag [#allocation3], %s170_s8  ;;  %s185_s28 = int_to_ptr.vmem [resolvable:$true] %s184_s28 }
  0x20   : > { %p1111_p3 = pneg %p1451_p1  ;;  %s1122_s23 = scalar_lea.vmem %s185_s28, 16384 }
  0x21   : > { %p1123_p6 = scmp.ne.s32.totalorder %s185_s28, %s1122_s23  ;;  %s1306_s4 = smov [#allocation2]  }
  0x22   : > { %s183_s24 = scalar_lea.hbm %s2166_s0, %s1003_s10  ;;  %s1127_s11 = sshll.u32 %s1306_s4, 4  ;;  %s1128_s11 = int_to_ptr.vmem [resolvable:$false] %s1127_s11 }
  0x23   : > { %p1125_p8 = pnand %p1123_p6, %p1111_p3  ;;  %s1129_s9 = scalar_lea.vmem %s1128_s11, 32768 }
  0x24   : > { %p1130_p12 = scmp.lt.s32.totalorder %s185_s28, %s1128_s11  ;;  %p1131_p2 = scmp.lt.s32.totalorder %s1129_s9, %s1122_s23 }
  0x25   : > { %p1126_p11 = pneg %p1125_p8 }
  0x26   : > { %p1132_p10 = por %p1131_p2, %p1130_p12 }
  0x28   : > { %p1133_p0 = pnand %p1132_p10, %p1126_p11 }
  0x2a   : > { %1136 = shalt.err (!%p1133_p0)
}
  0x2b   : > { %s1307_s25 = smov 32768   ;;  %s1308_s4 = smov 8192  }
  0x2c   : > { %s1309_s23 = smov 512   ;;  %p990_p2 = scmp.ge.s32.totalorder %s1304_s20, 1 }
  0x2d   : > { %1018 = dma.hbm_to_vmem [thread:$0]  (!%p1451_p1), %s183_s24, 16384, %s185_s28, %s171_s30, %s1307_s25, %s1308_s4, %s1309_s23  }
  0x2e   : > { %p217_p4 = scmp.lt.s32.totalorder %s1304_s20, 3  ;;  %s77_s21 = sadd.s32 1, %s1280_s14 }
  0x2f   : > { %p2169_p12 = scmp.eq.s32.totalorder %s1421_s5, 0  ;;  %p84_p0 = scmp.ne.s32.totalorder %s1280_s14, %s1276_s13 }
  0x30   : > { %p1464_p10 = pnand %p990_p2, %p217_p4  ;;  %p90_p3 = scmp.ne.s32.totalorder %s1276_s13, %s1272_s12 }
  0x31   : > { %s1472_s27 = scalar_select %p2169_p12, %s1280_s14, %s77_s21  }
  0x32   : > { %s194_s11 = sand.u32 1, %s1280_s14   ;;  %s1484_s0 = scalar_lea.hbm %s2153_s1, %s1003_s10 }
  0x33   : > { %p2170_p1 = scmp.eq.s32.totalorder %s1304_s20, 0  ;;  %p1490_p8 = por %p90_p3, %p1401_p5 }
  0x34   : > { %s987_s5 = sshll.u32 %s194_s11, 10  ;;  %s889_s28 = scalar_lea.hbm %s1484_s0, 16384 }
  0x35   : > { %p86_p6 = por %p84_p0, %p2170_p1  ;;  %s198_s30 = scalar_lea.vmem [#allocation5], %s987_s5 }
  0x36   : > { %s209_s21 = sshll.u32 %s198_s30, 4  ;;  %s195_s10 = scalar_lea.sflag [#allocation6], %s194_s11  ;;  %s210_s21 = int_to_ptr.vmem [resolvable:$true] %s209_s21 }
  0x37   : > { %p1497_p11 = pnand %p1029_p13, %p86_p6  ;;  %s1150_s22 = scalar_lea.vmem %s210_s21, 16384 }
  0x38   : > { %p1151_p4 = scmp.ne.s32.totalorder %s210_s21, %s1150_s22  ;;  %s1310_s26 = smov [#allocation5]  }
  0x39   : > { %p1139_p2 = pneg %p1497_p11  ;;  %s1155_s9 = sshll.u32 %s1310_s26, 4  ;;  %s1156_s9 = int_to_ptr.vmem [resolvable:$false] %s1155_s9 }
  0x3a   : > { %s1157_s0 = scalar_lea.vmem %s1156_s9, 32768  ;;  %p1158_p0 = scmp.lt.s32.totalorder %s210_s21, %s1156_s9 }
  0x3b   : > { %p1153_p5 = pnand %p1151_p4, %p1139_p2  ;;  %p1159_p3 = scmp.lt.s32.totalorder %s1157_s0, %s1150_s22 }
  0x3d   : > { %p1154_p12 = pneg %p1153_p5  ;;  %p1160_p1 = por %p1159_p3, %p1158_p0 }
  0x3f   : > { %p1161_p13 = pnand %p1160_p1, %p1154_p12 }
  0x41   : > { %1164 = shalt.err (!%p1161_p13)
}
  0x42   : > { %1021 = dma.hbm_to_vmem [thread:$0]  (!%p1497_p11), %s889_s28, 16384, %s210_s21, %s195_s10, %s1307_s25, %s1308_s4, %s1309_s23  }
  0x43   : > { %221 = sbr.rel (%p1464_p10) target bundleno = 241 (0xf1), region = 28  ;;  %s1511_s11 = sand.u32 (!%p1464_p10), 1, %s1288_s16  }
  0x44   : > { %s1514_s5 = sshll.u32 (!%p1464_p10), %s1511_s11, 10  ;;  %s224_s30 = scalar_lea.sflag (!%p1464_p10), [#allocation3], %s1511_s11 }
  0x45   : > { %s1518_s22 = scalar_lea.vmem (!%p1464_p10), [#allocation2], %s1514_s5 }
  0x48   : > { %1255 = dma.done.wait (%p1413_p7), %s224_s30, 16384  }
  0x49   : > { %1257 = vsyncadd (%p1413_p7), %s224_s30, 4294950912  ;;  %s232_s25 = sand.u32 1, %s1276_s13  }
  0x4a   : > { %s992_s4 = sshll.u32 %s232_s25, 10  ;;  %s233_s23 = scalar_lea.sflag [#allocation6], %s232_s25 }
  0x4b   : > { %s1525_s8 = scalar_lea.vmem [#allocation5], %s992_s4 }
  0x4c   : > { %1259 = dma.done.wait (%p1490_p8), %s233_s23, 16384  }
  0x4d   : > { %1261 = vsyncadd (%p1490_p8), %s233_s23, 4294950912  ;;  %v278_v0 = vld [vmem:[%s1518_s22] sm:$0xff]  ;;  %v279_v1 = vld [vmem:[%s1518_s22 + $0x8] sm:$0xff]  ;;  %s1535_s29 = scalar_lea.vmem [#allocation7], %s1514_s5  ;;  %s1792_s24 = scalar_lea.vmem [#allocation8], %s1514_s5 }
  0x4e   : > { %v280_v2 = vld [vmem:[%s1518_s22 + $0x10] sm:$0xff]  ;;  %406 = vst [vmem:[%s1535_s29] sm:$0xff] %v278_v0  ;;  %407 = vst [vmem:[%s1535_s29 + $0x8] sm:$0xff] %v279_v1  ;;  %v281_v3 = vld [vmem:[%s1518_s22 + $0x18] sm:$0xff]  ;;  %s1005_s28 = sshll.u32 %s1296_s18, 13  ;;  %s812_s21 = sshll.u32 %s1535_s29, 4  ;;  %s2035_s21 = int_to_ptr.vmem [resolvable:$true] %s812_s21 }
  0x4f   : > { %408 = vst [vmem:[%s1535_s29 + $0x10] sm:$0xff] %v280_v2  ;;  %v282_v4 = vld [vmem:[%s1518_s22 + $0x20] sm:$0xff]  ;;  %v283_v5 = vld [vmem:[%s1518_s22 + $0x28] sm:$0xff]  ;;  %409 = vst [vmem:[%s1535_s29 + $0x18] sm:$0xff] %v281_v3  ;;  %s2027_s26 = scalar_lea.hbm %s2154_s2, %s1005_s28  ;;  %s831_s9 = sshll.u32 %s1792_s24, 4  ;;  %s2063_s9 = int_to_ptr.vmem [resolvable:$true] %s831_s9 }
  0x50   : > { %410 = vst [vmem:[%s1535_s29 + $0x20] sm:$0xff] %v282_v4  ;;  %411 = vst [vmem:[%s1535_s29 + $0x28] sm:$0xff] %v283_v5  ;;  %v284_v6 = vld [vmem:[%s1518_s22 + $0x30] sm:$0xff]  ;;  %v285_v7 = vld [vmem:[%s1518_s22 + $0x38] sm:$0xff]  ;;  %s2061_s30 = scalar_lea.hbm %s2155_s3, %s1005_s28  ;;  %s1166_s25 = scalar_lea.vmem %s2035_s21, 16384 }
  0x51   : > { %v286_v8 = vld [vmem:[%s1518_s22 + $0x40] sm:$0xff]  ;;  %412 = vst [vmem:[%s1535_s29 + $0x30] sm:$0xff] %v284_v6  ;;  %413 = vst [vmem:[%s1535_s29 + $0x38] sm:$0xff] %v285_v7  ;;  %v287_v9 = vld [vmem:[%s1518_s22 + $0x48] sm:$0xff]  ;;  %p1167_p7 = scmp.ne.s32.totalorder %s2035_s21, %s1166_s25  ;;  %s1311_s18 = smov [#allocation7]  }
  0x52   : > { %414 = vst [vmem:[%s1535_s29 + $0x40] sm:$0xff] %v286_v8  ;;  %v288_v10 = vld [vmem:[%s1518_s22 + $0x50] sm:$0xff]  ;;  %v289_v11 = vld [vmem:[%s1518_s22 + $0x58] sm:$0xff]  ;;  %415 = vst [vmem:[%s1535_s29 + $0x48] sm:$0xff] %v287_v9  ;;  %s1170_s4 = sshll.u32 %s1311_s18, 4  ;;  %s1171_s4 = int_to_ptr.vmem [resolvable:$false] %s1170_s4 }
  0x53   : > { %416 = vst [vmem:[%s1535_s29 + $0x50] sm:$0xff] %v288_v10  ;;  %417 = vst [vmem:[%s1535_s29 + $0x58] sm:$0xff] %v289_v11  ;;  %v290_v12 = vld [vmem:[%s1518_s22 + $0x60] sm:$0xff]  ;;  %v291_v13 = vld [vmem:[%s1518_s22 + $0x68] sm:$0xff]  ;;  %p1168_p10 = pnand %p1167_p7, %p1426_p9  ;;  %s1172_s23 = scalar_lea.vmem %s1171_s4, 32768 }
  0x54   : > { %v292_v14 = vld [vmem:[%s1518_s22 + $0x70] sm:$0xff]  ;;  %418 = vst [vmem:[%s1535_s29 + $0x60] sm:$0xff] %v290_v12  ;;  %419 = vst [vmem:[%s1535_s29 + $0x68] sm:$0xff] %v291_v13  ;;  %v293_v15 = vld [vmem:[%s1518_s22 + $0x78] sm:$0xff]  ;;  %p1173_p8 = scmp.lt.s32.totalorder %s2035_s21, %s1171_s4  ;;  %p1174_p11 = scmp.lt.s32.totalorder %s1172_s23, %s1166_s25 }
  0x55   : > { %420 = vst [vmem:[%s1535_s29 + $0x70] sm:$0xff] %v292_v14  ;;  %v294_v16 = vld [vmem:[%s1518_s22 + $0x80] sm:$0xff]  ;;  %v295_v17 = vld [vmem:[%s1518_s22 + $0x88] sm:$0xff]  ;;  %421 = vst [vmem:[%s1535_s29 + $0x78] sm:$0xff] %v293_v15  ;;  %p1169_p6 = pneg %p1168_p10 }
  0x56   : > { %422 = vst [vmem:[%s1535_s29 + $0x80] sm:$0xff] %v294_v16  ;;  %423 = vst [vmem:[%s1535_s29 + $0x88] sm:$0xff] %v295_v17  ;;  %v296_v18 = vld [vmem:[%s1518_s22 + $0x90] sm:$0xff]  ;;  %v297_v19 = vld [vmem:[%s1518_s22 + $0x98] sm:$0xff]  ;;  %p1175_p2 = por %p1174_p11, %p1173_p8 }
  0x57   : > { %v298_v20 = vld [vmem:[%s1518_s22 + $0xa0] sm:$0xff]  ;;  %424 = vst [vmem:[%s1535_s29 + $0x90] sm:$0xff] %v296_v18  ;;  %425 = vst [vmem:[%s1535_s29 + $0x98] sm:$0xff] %v297_v19  ;;  %v299_v21 = vld [vmem:[%s1518_s22 + $0xa8] sm:$0xff] }
  0x58   : > { %426 = vst [vmem:[%s1535_s29 + $0xa0] sm:$0xff] %v298_v20  ;;  %v300_v22 = vld [vmem:[%s1518_s22 + $0xb0] sm:$0xff]  ;;  %v301_v23 = vld [vmem:[%s1518_s22 + $0xb8] sm:$0xff]  ;;  %427 = vst [vmem:[%s1535_s29 + $0xa8] sm:$0xff] %v299_v21  ;;  %p1176_p4 = pnand %p1175_p2, %p1169_p6 }
  0x59   : > { %428 = vst [vmem:[%s1535_s29 + $0xb0] sm:$0xff] %v300_v22  ;;  %429 = vst [vmem:[%s1535_s29 + $0xb8] sm:$0xff] %v301_v23  ;;  %v302_v24 = vld [vmem:[%s1518_s22 + $0xc0] sm:$0xff]  ;;  %v303_v25 = vld [vmem:[%s1518_s22 + $0xc8] sm:$0xff] }
  0x5a   : > { %v304_v26 = vld [vmem:[%s1518_s22 + $0xd0] sm:$0xff]  ;;  %430 = vst [vmem:[%s1535_s29 + $0xc0] sm:$0xff] %v302_v24  ;;  %431 = vst [vmem:[%s1535_s29 + $0xc8] sm:$0xff] %v303_v25  ;;  %v305_v27 = vld [vmem:[%s1518_s22 + $0xd8] sm:$0xff] }
  0x5b   : > { %432 = vst [vmem:[%s1535_s29 + $0xd0] sm:$0xff] %v304_v26  ;;  %v306_v28 = vld [vmem:[%s1518_s22 + $0xe0] sm:$0xff]  ;;  %v307_v29 = vld [vmem:[%s1518_s22 + $0xe8] sm:$0xff]  ;;  %433 = vst [vmem:[%s1535_s29 + $0xd8] sm:$0xff] %v305_v27 }
  0x5c   : > { %434 = vst [vmem:[%s1535_s29 + $0xe0] sm:$0xff] %v306_v28  ;;  %435 = vst [vmem:[%s1535_s29 + $0xe8] sm:$0xff] %v307_v29  ;;  %v308_v30 = vld [vmem:[%s1518_s22 + $0xf0] sm:$0xff]  ;;  %v309_v31 = vld [vmem:[%s1518_s22 + $0xf8] sm:$0xff] }
  0x5d   : > { %v310_v32 = vld [vmem:[%s1518_s22 + $0x100] sm:$0xff]  ;;  %436 = vst [vmem:[%s1535_s29 + $0xf0] sm:$0xff] %v308_v30  ;;  %437 = vst [vmem:[%s1535_s29 + $0xf8] sm:$0xff] %v309_v31  ;;  %v311_v33 = vld [vmem:[%s1518_s22 + $0x108] sm:$0xff] }
  0x5e   : > { %438 = vst [vmem:[%s1535_s29 + $0x100] sm:$0xff] %v310_v32  ;;  %v312_v34 = vld [vmem:[%s1518_s22 + $0x110] sm:$0xff]  ;;  %v313_v35 = vld [vmem:[%s1518_s22 + $0x118] sm:$0xff]  ;;  %439 = vst [vmem:[%s1535_s29 + $0x108] sm:$0xff] %v311_v33 }
  0x5f   : > { %440 = vst [vmem:[%s1535_s29 + $0x110] sm:$0xff] %v312_v34  ;;  %441 = vst [vmem:[%s1535_s29 + $0x118] sm:$0xff] %v313_v35  ;;  %v314_v36 = vld [vmem:[%s1518_s22 + $0x120] sm:$0xff]  ;;  %v315_v37 = vld [vmem:[%s1518_s22 + $0x128] sm:$0xff] }
  0x60   : > { %v316_v38 = vld [vmem:[%s1518_s22 + $0x130] sm:$0xff]  ;;  %442 = vst [vmem:[%s1535_s29 + $0x120] sm:$0xff] %v314_v36  ;;  %443 = vst [vmem:[%s1535_s29 + $0x128] sm:$0xff] %v315_v37  ;;  %v317_v39 = vld [vmem:[%s1518_s22 + $0x138] sm:$0xff] }
  0x61   : > { %444 = vst [vmem:[%s1535_s29 + $0x130] sm:$0xff] %v316_v38  ;;  %v318_v40 = vld [vmem:[%s1518_s22 + $0x140] sm:$0xff]  ;;  %v319_v41 = vld [vmem:[%s1518_s22 + $0x148] sm:$0xff]  ;;  %445 = vst [vmem:[%s1535_s29 + $0x138] sm:$0xff] %v317_v39 }
  0x62   : > { %446 = vst [vmem:[%s1535_s29 + $0x140] sm:$0xff] %v318_v40  ;;  %447 = vst [vmem:[%s1535_s29 + $0x148] sm:$0xff] %v319_v41  ;;  %v320_v42 = vld [vmem:[%s1518_s22 + $0x150] sm:$0xff]  ;;  %v321_v43 = vld [vmem:[%s1518_s22 + $0x158] sm:$0xff] }
  0x63   : > { %v322_v44 = vld [vmem:[%s1518_s22 + $0x160] sm:$0xff]  ;;  %448 = vst [vmem:[%s1535_s29 + $0x150] sm:$0xff] %v320_v42  ;;  %449 = vst [vmem:[%s1535_s29 + $0x158] sm:$0xff] %v321_v43  ;;  %v323_v45 = vld [vmem:[%s1518_s22 + $0x168] sm:$0xff] }
  0x64   : > { %450 = vst [vmem:[%s1535_s29 + $0x160] sm:$0xff] %v322_v44  ;;  %v324_v46 = vld [vmem:[%s1518_s22 + $0x170] sm:$0xff]  ;;  %v325_v47 = vld [vmem:[%s1518_s22 + $0x178] sm:$0xff]  ;;  %451 = vst [vmem:[%s1535_s29 + $0x168] sm:$0xff] %v323_v45 }
  0x65   : > { %452 = vst [vmem:[%s1535_s29 + $0x170] sm:$0xff] %v324_v46  ;;  %453 = vst [vmem:[%s1535_s29 + $0x178] sm:$0xff] %v325_v47  ;;  %v326_v48 = vld [vmem:[%s1518_s22 + $0x180] sm:$0xff]  ;;  %v327_v49 = vld [vmem:[%s1518_s22 + $0x188] sm:$0xff] }
  0x66   : > { %v328_v50 = vld [vmem:[%s1518_s22 + $0x190] sm:$0xff]  ;;  %454 = vst [vmem:[%s1535_s29 + $0x180] sm:$0xff] %v326_v48  ;;  %455 = vst [vmem:[%s1535_s29 + $0x188] sm:$0xff] %v327_v49  ;;  %v329_v51 = vld [vmem:[%s1518_s22 + $0x198] sm:$0xff] }
  0x67   : > { %456 = vst [vmem:[%s1535_s29 + $0x190] sm:$0xff] %v328_v50  ;;  %v330_v52 = vld [vmem:[%s1518_s22 + $0x1a0] sm:$0xff]  ;;  %v331_v53 = vld [vmem:[%s1518_s22 + $0x1a8] sm:$0xff]  ;;  %457 = vst [vmem:[%s1535_s29 + $0x198] sm:$0xff] %v329_v51 }
  0x68   : > { %458 = vst [vmem:[%s1535_s29 + $0x1a0] sm:$0xff] %v330_v52  ;;  %459 = vst [vmem:[%s1535_s29 + $0x1a8] sm:$0xff] %v331_v53  ;;  %v332_v54 = vld [vmem:[%s1518_s22 + $0x1b0] sm:$0xff]  ;;  %v333_v55 = vld [vmem:[%s1518_s22 + $0x1b8] sm:$0xff] }
  0x69   : > { %v334_v56 = vld [vmem:[%s1518_s22 + $0x1c0] sm:$0xff]  ;;  %460 = vst [vmem:[%s1535_s29 + $0x1b0] sm:$0xff] %v332_v54  ;;  %461 = vst [vmem:[%s1535_s29 + $0x1b8] sm:$0xff] %v333_v55  ;;  %v335_v57 = vld [vmem:[%s1518_s22 + $0x1c8] sm:$0xff] }
  0x6a   : > { %462 = vst [vmem:[%s1535_s29 + $0x1c0] sm:$0xff] %v334_v56  ;;  %v336_v58 = vld [vmem:[%s1518_s22 + $0x1d0] sm:$0xff]  ;;  %v337_v59 = vld [vmem:[%s1518_s22 + $0x1d8] sm:$0xff]  ;;  %463 = vst [vmem:[%s1535_s29 + $0x1c8] sm:$0xff] %v335_v57 }
  0x6b   : > { %464 = vst [vmem:[%s1535_s29 + $0x1d0] sm:$0xff] %v336_v58  ;;  %465 = vst [vmem:[%s1535_s29 + $0x1d8] sm:$0xff] %v337_v59  ;;  %v338_v60 = vld [vmem:[%s1518_s22 + $0x1e0] sm:$0xff]  ;;  %v339_v61 = vld [vmem:[%s1518_s22 + $0x1e8] sm:$0xff] }
  0x6c   : > { %v340_v62 = vld [vmem:[%s1518_s22 + $0x1f0] sm:$0xff]  ;;  %466 = vst [vmem:[%s1535_s29 + $0x1e0] sm:$0xff] %v338_v60  ;;  %467 = vst [vmem:[%s1535_s29 + $0x1e8] sm:$0xff] %v339_v61  ;;  %v341_v63 = vld [vmem:[%s1518_s22 + $0x1f8] sm:$0xff] }
  0x6d   : > { %468 = vst [vmem:[%s1535_s29 + $0x1f0] sm:$0xff] %v340_v62  ;;  %v342_v0 = vld [vmem:[%s1518_s22 + $0x200] sm:$0xff]  ;;  %v343_v1 = vld [vmem:[%s1518_s22 + $0x208] sm:$0xff]  ;;  %469 = vst [vmem:[%s1535_s29 + $0x1f8] sm:$0xff] %v341_v63 }
  0x6e   : > { %470 = vst [vmem:[%s1535_s29 + $0x200] sm:$0xff] %v342_v0  ;;  %471 = vst [vmem:[%s1535_s29 + $0x208] sm:$0xff] %v343_v1  ;;  %v344_v2 = vld [vmem:[%s1518_s22 + $0x210] sm:$0xff]  ;;  %v345_v3 = vld [vmem:[%s1518_s22 + $0x218] sm:$0xff] }
  0x6f   : > { %v346_v4 = vld [vmem:[%s1518_s22 + $0x220] sm:$0xff]  ;;  %472 = vst [vmem:[%s1535_s29 + $0x210] sm:$0xff] %v344_v2  ;;  %473 = vst [vmem:[%s1535_s29 + $0x218] sm:$0xff] %v345_v3  ;;  %v347_v5 = vld [vmem:[%s1518_s22 + $0x228] sm:$0xff] }
  0x70   : > { %474 = vst [vmem:[%s1535_s29 + $0x220] sm:$0xff] %v346_v4  ;;  %v348_v6 = vld [vmem:[%s1518_s22 + $0x230] sm:$0xff]  ;;  %v349_v7 = vld [vmem:[%s1518_s22 + $0x238] sm:$0xff]  ;;  %475 = vst [vmem:[%s1535_s29 + $0x228] sm:$0xff] %v347_v5 }
  0x71   : > { %476 = vst [vmem:[%s1535_s29 + $0x230] sm:$0xff] %v348_v6  ;;  %477 = vst [vmem:[%s1535_s29 + $0x238] sm:$0xff] %v349_v7  ;;  %v350_v8 = vld [vmem:[%s1518_s22 + $0x240] sm:$0xff]  ;;  %v351_v9 = vld [vmem:[%s1518_s22 + $0x248] sm:$0xff] }
  0x72   : > { %v352_v10 = vld [vmem:[%s1518_s22 + $0x250] sm:$0xff]  ;;  %478 = vst [vmem:[%s1535_s29 + $0x240] sm:$0xff] %v350_v8  ;;  %479 = vst [vmem:[%s1535_s29 + $0x248] sm:$0xff] %v351_v9  ;;  %v353_v11 = vld [vmem:[%s1518_s22 + $0x258] sm:$0xff] }
  0x73   : > { %480 = vst [vmem:[%s1535_s29 + $0x250] sm:$0xff] %v352_v10  ;;  %v354_v12 = vld [vmem:[%s1518_s22 + $0x260] sm:$0xff]  ;;  %v355_v13 = vld [vmem:[%s1518_s22 + $0x268] sm:$0xff]  ;;  %481 = vst [vmem:[%s1535_s29 + $0x258] sm:$0xff] %v353_v11 }
  0x74   : > { %482 = vst [vmem:[%s1535_s29 + $0x260] sm:$0xff] %v354_v12  ;;  %483 = vst [vmem:[%s1535_s29 + $0x268] sm:$0xff] %v355_v13  ;;  %v356_v14 = vld [vmem:[%s1518_s22 + $0x270] sm:$0xff]  ;;  %v357_v15 = vld [vmem:[%s1518_s22 + $0x278] sm:$0xff] }
  0x75   : > { %v358_v16 = vld [vmem:[%s1518_s22 + $0x280] sm:$0xff]  ;;  %484 = vst [vmem:[%s1535_s29 + $0x270] sm:$0xff] %v356_v14  ;;  %485 = vst [vmem:[%s1535_s29 + $0x278] sm:$0xff] %v357_v15  ;;  %v359_v17 = vld [vmem:[%s1518_s22 + $0x288] sm:$0xff] }
  0x76   : > { %486 = vst [vmem:[%s1535_s29 + $0x280] sm:$0xff] %v358_v16  ;;  %v360_v18 = vld [vmem:[%s1518_s22 + $0x290] sm:$0xff]  ;;  %v361_v19 = vld [vmem:[%s1518_s22 + $0x298] sm:$0xff]  ;;  %487 = vst [vmem:[%s1535_s29 + $0x288] sm:$0xff] %v359_v17 }
  0x77   : > { %488 = vst [vmem:[%s1535_s29 + $0x290] sm:$0xff] %v360_v18  ;;  %489 = vst [vmem:[%s1535_s29 + $0x298] sm:$0xff] %v361_v19  ;;  %v362_v20 = vld [vmem:[%s1518_s22 + $0x2a0] sm:$0xff]  ;;  %v363_v21 = vld [vmem:[%s1518_s22 + $0x2a8] sm:$0xff] }
  0x78   : > { %v364_v22 = vld [vmem:[%s1518_s22 + $0x2b0] sm:$0xff]  ;;  %490 = vst [vmem:[%s1535_s29 + $0x2a0] sm:$0xff] %v362_v20  ;;  %491 = vst [vmem:[%s1535_s29 + $0x2a8] sm:$0xff] %v363_v21  ;;  %v365_v23 = vld [vmem:[%s1518_s22 + $0x2b8] sm:$0xff] }
  0x79   : > { %492 = vst [vmem:[%s1535_s29 + $0x2b0] sm:$0xff] %v364_v22  ;;  %v366_v24 = vld [vmem:[%s1518_s22 + $0x2c0] sm:$0xff]  ;;  %v367_v25 = vld [vmem:[%s1518_s22 + $0x2c8] sm:$0xff]  ;;  %493 = vst [vmem:[%s1535_s29 + $0x2b8] sm:$0xff] %v365_v23 }
  0x7a   : > { %494 = vst [vmem:[%s1535_s29 + $0x2c0] sm:$0xff] %v366_v24  ;;  %495 = vst [vmem:[%s1535_s29 + $0x2c8] sm:$0xff] %v367_v25  ;;  %v368_v26 = vld [vmem:[%s1518_s22 + $0x2d0] sm:$0xff]  ;;  %v369_v27 = vld [vmem:[%s1518_s22 + $0x2d8] sm:$0xff] }
  0x7b   : > { %v370_v28 = vld [vmem:[%s1518_s22 + $0x2e0] sm:$0xff]  ;;  %496 = vst [vmem:[%s1535_s29 + $0x2d0] sm:$0xff] %v368_v26  ;;  %497 = vst [vmem:[%s1535_s29 + $0x2d8] sm:$0xff] %v369_v27  ;;  %v371_v29 = vld [vmem:[%s1518_s22 + $0x2e8] sm:$0xff] }
  0x7c   : > { %498 = vst [vmem:[%s1535_s29 + $0x2e0] sm:$0xff] %v370_v28  ;;  %v372_v30 = vld [vmem:[%s1518_s22 + $0x2f0] sm:$0xff]  ;;  %v373_v31 = vld [vmem:[%s1518_s22 + $0x2f8] sm:$0xff]  ;;  %499 = vst [vmem:[%s1535_s29 + $0x2e8] sm:$0xff] %v371_v29 }
  0x7d   : > { %500 = vst [vmem:[%s1535_s29 + $0x2f0] sm:$0xff] %v372_v30  ;;  %501 = vst [vmem:[%s1535_s29 + $0x2f8] sm:$0xff] %v373_v31  ;;  %v374_v32 = vld [vmem:[%s1518_s22 + $0x300] sm:$0xff]  ;;  %v375_v33 = vld [vmem:[%s1518_s22 + $0x308] sm:$0xff] }
  0x7e   : > { %v376_v34 = vld [vmem:[%s1518_s22 + $0x310] sm:$0xff]  ;;  %502 = vst [vmem:[%s1535_s29 + $0x300] sm:$0xff] %v374_v32  ;;  %503 = vst [vmem:[%s1535_s29 + $0x308] sm:$0xff] %v375_v33  ;;  %v377_v35 = vld [vmem:[%s1518_s22 + $0x318] sm:$0xff] }
  0x7f   : > { %504 = vst [vmem:[%s1535_s29 + $0x310] sm:$0xff] %v376_v34  ;;  %v378_v36 = vld [vmem:[%s1518_s22 + $0x320] sm:$0xff]  ;;  %v379_v37 = vld [vmem:[%s1518_s22 + $0x328] sm:$0xff]  ;;  %505 = vst [vmem:[%s1535_s29 + $0x318] sm:$0xff] %v377_v35 }
  0x80   : > { %506 = vst [vmem:[%s1535_s29 + $0x320] sm:$0xff] %v378_v36  ;;  %507 = vst [vmem:[%s1535_s29 + $0x328] sm:$0xff] %v379_v37  ;;  %v380_v38 = vld [vmem:[%s1518_s22 + $0x330] sm:$0xff]  ;;  %v381_v39 = vld [vmem:[%s1518_s22 + $0x338] sm:$0xff] }
  0x81   : > { %v382_v40 = vld [vmem:[%s1518_s22 + $0x340] sm:$0xff]  ;;  %508 = vst [vmem:[%s1535_s29 + $0x330] sm:$0xff] %v380_v38  ;;  %509 = vst [vmem:[%s1535_s29 + $0x338] sm:$0xff] %v381_v39  ;;  %v383_v41 = vld [vmem:[%s1518_s22 + $0x348] sm:$0xff] }
  0x82   : > { %510 = vst [vmem:[%s1535_s29 + $0x340] sm:$0xff] %v382_v40  ;;  %v384_v42 = vld [vmem:[%s1518_s22 + $0x350] sm:$0xff]  ;;  %v385_v43 = vld [vmem:[%s1518_s22 + $0x358] sm:$0xff]  ;;  %511 = vst [vmem:[%s1535_s29 + $0x348] sm:$0xff] %v383_v41 }
  0x83   : > { %512 = vst [vmem:[%s1535_s29 + $0x350] sm:$0xff] %v384_v42  ;;  %513 = vst [vmem:[%s1535_s29 + $0x358] sm:$0xff] %v385_v43  ;;  %v386_v44 = vld [vmem:[%s1518_s22 + $0x360] sm:$0xff]  ;;  %v387_v45 = vld [vmem:[%s1518_s22 + $0x368] sm:$0xff] }
  0x84   : > { %v388_v46 = vld [vmem:[%s1518_s22 + $0x370] sm:$0xff]  ;;  %514 = vst [vmem:[%s1535_s29 + $0x360] sm:$0xff] %v386_v44  ;;  %515 = vst [vmem:[%s1535_s29 + $0x368] sm:$0xff] %v387_v45  ;;  %v389_v47 = vld [vmem:[%s1518_s22 + $0x378] sm:$0xff] }
  0x85   : > { %516 = vst [vmem:[%s1535_s29 + $0x370] sm:$0xff] %v388_v46  ;;  %v390_v48 = vld [vmem:[%s1518_s22 + $0x380] sm:$0xff]  ;;  %v391_v49 = vld [vmem:[%s1518_s22 + $0x388] sm:$0xff]  ;;  %517 = vst [vmem:[%s1535_s29 + $0x378] sm:$0xff] %v389_v47 }
  0x86   : > { %518 = vst [vmem:[%s1535_s29 + $0x380] sm:$0xff] %v390_v48  ;;  %519 = vst [vmem:[%s1535_s29 + $0x388] sm:$0xff] %v391_v49  ;;  %v392_v50 = vld [vmem:[%s1518_s22 + $0x390] sm:$0xff]  ;;  %v393_v51 = vld [vmem:[%s1518_s22 + $0x398] sm:$0xff] }
  0x87   : > { %v394_v52 = vld [vmem:[%s1518_s22 + $0x3a0] sm:$0xff]  ;;  %520 = vst [vmem:[%s1535_s29 + $0x390] sm:$0xff] %v392_v50  ;;  %521 = vst [vmem:[%s1535_s29 + $0x398] sm:$0xff] %v393_v51  ;;  %v395_v53 = vld [vmem:[%s1518_s22 + $0x3a8] sm:$0xff] }
  0x88   : > { %522 = vst [vmem:[%s1535_s29 + $0x3a0] sm:$0xff] %v394_v52  ;;  %v396_v54 = vld [vmem:[%s1518_s22 + $0x3b0] sm:$0xff]  ;;  %v397_v55 = vld [vmem:[%s1518_s22 + $0x3b8] sm:$0xff]  ;;  %523 = vst [vmem:[%s1535_s29 + $0x3a8] sm:$0xff] %v395_v53 }
  0x89   : > { %524 = vst [vmem:[%s1535_s29 + $0x3b0] sm:$0xff] %v396_v54  ;;  %525 = vst [vmem:[%s1535_s29 + $0x3b8] sm:$0xff] %v397_v55  ;;  %v398_v56 = vld [vmem:[%s1518_s22 + $0x3c0] sm:$0xff]  ;;  %v399_v57 = vld [vmem:[%s1518_s22 + $0x3c8] sm:$0xff] }
  0x8a   : > { %v400_v58 = vld [vmem:[%s1518_s22 + $0x3d0] sm:$0xff]  ;;  %526 = vst [vmem:[%s1535_s29 + $0x3c0] sm:$0xff] %v398_v56  ;;  %527 = vst [vmem:[%s1535_s29 + $0x3c8] sm:$0xff] %v399_v57  ;;  %v401_v59 = vld [vmem:[%s1518_s22 + $0x3d8] sm:$0xff] }
  0x8b   : > { %528 = vst [vmem:[%s1535_s29 + $0x3d0] sm:$0xff] %v400_v58  ;;  %v402_v60 = vld [vmem:[%s1518_s22 + $0x3e0] sm:$0xff]  ;;  %v403_v61 = vld [vmem:[%s1518_s22 + $0x3e8] sm:$0xff]  ;;  %529 = vst [vmem:[%s1535_s29 + $0x3d8] sm:$0xff] %v401_v59 }
  0x8c   : > { %530 = vst [vmem:[%s1535_s29 + $0x3e0] sm:$0xff] %v402_v60  ;;  %531 = vst [vmem:[%s1535_s29 + $0x3e8] sm:$0xff] %v403_v61  ;;  %v404_v62 = vld [vmem:[%s1518_s22 + $0x3f0] sm:$0xff]  ;;  %v405_v63 = vld [vmem:[%s1518_s22 + $0x3f8] sm:$0xff]  ;;  %s791_s22 = scalar_lea.sflag [#allocation4], %s1511_s11 }
  0x8d   : > { %v534_v0 = vld [vmem:[%s1525_s8] sm:$0xff]  ;;  %532 = vst [vmem:[%s1535_s29 + $0x3f0] sm:$0xff] %v404_v62  ;;  %533 = vst [vmem:[%s1535_s29 + $0x3f8] sm:$0xff] %v405_v63  ;;  %v535_v1 = vld [vmem:[%s1525_s8 + $0x8] sm:$0xff] }
  0x8e   : > { %662 = vst [vmem:[%s1792_s24] sm:$0xff] %v534_v0  ;;  %v536_v2 = vld [vmem:[%s1525_s8 + $0x10] sm:$0xff]  ;;  %v537_v3 = vld [vmem:[%s1525_s8 + $0x18] sm:$0xff]  ;;  %663 = vst [vmem:[%s1792_s24 + $0x8] sm:$0xff] %v535_v1 }
  0x8f   : > { %664 = vst [vmem:[%s1792_s24 + $0x10] sm:$0xff] %v536_v2  ;;  %665 = vst [vmem:[%s1792_s24 + $0x18] sm:$0xff] %v537_v3  ;;  %v538_v4 = vld [vmem:[%s1525_s8 + $0x20] sm:$0xff]  ;;  %v539_v5 = vld [vmem:[%s1525_s8 + $0x28] sm:$0xff] }
  0x90   : > { %v540_v6 = vld [vmem:[%s1525_s8 + $0x30] sm:$0xff]  ;;  %666 = vst [vmem:[%s1792_s24 + $0x20] sm:$0xff] %v538_v4  ;;  %667 = vst [vmem:[%s1792_s24 + $0x28] sm:$0xff] %v539_v5  ;;  %v541_v7 = vld [vmem:[%s1525_s8 + $0x38] sm:$0xff] }
  0x91   : > { %668 = vst [vmem:[%s1792_s24 + $0x30] sm:$0xff] %v540_v6  ;;  %v542_v8 = vld [vmem:[%s1525_s8 + $0x40] sm:$0xff]  ;;  %v543_v9 = vld [vmem:[%s1525_s8 + $0x48] sm:$0xff]  ;;  %669 = vst [vmem:[%s1792_s24 + $0x38] sm:$0xff] %v541_v7 }
  0x92   : > { %670 = vst [vmem:[%s1792_s24 + $0x40] sm:$0xff] %v542_v8  ;;  %671 = vst [vmem:[%s1792_s24 + $0x48] sm:$0xff] %v543_v9  ;;  %v544_v10 = vld [vmem:[%s1525_s8 + $0x50] sm:$0xff]  ;;  %v545_v11 = vld [vmem:[%s1525_s8 + $0x58] sm:$0xff] }
  0x93   : > { %v546_v12 = vld [vmem:[%s1525_s8 + $0x60] sm:$0xff]  ;;  %672 = vst [vmem:[%s1792_s24 + $0x50] sm:$0xff] %v544_v10  ;;  %673 = vst [vmem:[%s1792_s24 + $0x58] sm:$0xff] %v545_v11  ;;  %v547_v13 = vld [vmem:[%s1525_s8 + $0x68] sm:$0xff] }
  0x94   : > { %674 = vst [vmem:[%s1792_s24 + $0x60] sm:$0xff] %v546_v12  ;;  %v548_v14 = vld [vmem:[%s1525_s8 + $0x70] sm:$0xff]  ;;  %v549_v15 = vld [vmem:[%s1525_s8 + $0x78] sm:$0xff]  ;;  %675 = vst [vmem:[%s1792_s24 + $0x68] sm:$0xff] %v547_v13 }
  0x95   : > { %676 = vst [vmem:[%s1792_s24 + $0x70] sm:$0xff] %v548_v14  ;;  %677 = vst [vmem:[%s1792_s24 + $0x78] sm:$0xff] %v549_v15  ;;  %v550_v16 = vld [vmem:[%s1525_s8 + $0x80] sm:$0xff]  ;;  %v551_v17 = vld [vmem:[%s1525_s8 + $0x88] sm:$0xff] }
  0x96   : > { %v552_v18 = vld [vmem:[%s1525_s8 + $0x90] sm:$0xff]  ;;  %678 = vst [vmem:[%s1792_s24 + $0x80] sm:$0xff] %v550_v16  ;;  %679 = vst [vmem:[%s1792_s24 + $0x88] sm:$0xff] %v551_v17  ;;  %v553_v19 = vld [vmem:[%s1525_s8 + $0x98] sm:$0xff] }
  0x97   : > { %680 = vst [vmem:[%s1792_s24 + $0x90] sm:$0xff] %v552_v18  ;;  %v554_v20 = vld [vmem:[%s1525_s8 + $0xa0] sm:$0xff]  ;;  %v555_v21 = vld [vmem:[%s1525_s8 + $0xa8] sm:$0xff]  ;;  %681 = vst [vmem:[%s1792_s24 + $0x98] sm:$0xff] %v553_v19 }
  0x98   : > { %682 = vst [vmem:[%s1792_s24 + $0xa0] sm:$0xff] %v554_v20  ;;  %683 = vst [vmem:[%s1792_s24 + $0xa8] sm:$0xff] %v555_v21  ;;  %v556_v22 = vld [vmem:[%s1525_s8 + $0xb0] sm:$0xff]  ;;  %v557_v23 = vld [vmem:[%s1525_s8 + $0xb8] sm:$0xff] }
  0x99   : > { %v558_v24 = vld [vmem:[%s1525_s8 + $0xc0] sm:$0xff]  ;;  %684 = vst [vmem:[%s1792_s24 + $0xb0] sm:$0xff] %v556_v22  ;;  %685 = vst [vmem:[%s1792_s24 + $0xb8] sm:$0xff] %v557_v23  ;;  %v559_v25 = vld [vmem:[%s1525_s8 + $0xc8] sm:$0xff] }
  0x9a   : > { %686 = vst [vmem:[%s1792_s24 + $0xc0] sm:$0xff] %v558_v24  ;;  %v560_v26 = vld [vmem:[%s1525_s8 + $0xd0] sm:$0xff]  ;;  %v561_v27 = vld [vmem:[%s1525_s8 + $0xd8] sm:$0xff]  ;;  %687 = vst [vmem:[%s1792_s24 + $0xc8] sm:$0xff] %v559_v25 }
  0x9b   : > { %688 = vst [vmem:[%s1792_s24 + $0xd0] sm:$0xff] %v560_v26  ;;  %689 = vst [vmem:[%s1792_s24 + $0xd8] sm:$0xff] %v561_v27  ;;  %v562_v28 = vld [vmem:[%s1525_s8 + $0xe0] sm:$0xff]  ;;  %v563_v29 = vld [vmem:[%s1525_s8 + $0xe8] sm:$0xff] }
  0x9c   : > { %v564_v30 = vld [vmem:[%s1525_s8 + $0xf0] sm:$0xff]  ;;  %690 = vst [vmem:[%s1792_s24 + $0xe0] sm:$0xff] %v562_v28  ;;  %691 = vst [vmem:[%s1792_s24 + $0xe8] sm:$0xff] %v563_v29  ;;  %v565_v31 = vld [vmem:[%s1525_s8 + $0xf8] sm:$0xff] }
  0x9d   : > { %692 = vst [vmem:[%s1792_s24 + $0xf0] sm:$0xff] %v564_v30  ;;  %v566_v32 = vld [vmem:[%s1525_s8 + $0x100] sm:$0xff]  ;;  %v567_v33 = vld [vmem:[%s1525_s8 + $0x108] sm:$0xff]  ;;  %693 = vst [vmem:[%s1792_s24 + $0xf8] sm:$0xff] %v565_v31 }
  0x9e   : > { %694 = vst [vmem:[%s1792_s24 + $0x100] sm:$0xff] %v566_v32  ;;  %695 = vst [vmem:[%s1792_s24 + $0x108] sm:$0xff] %v567_v33  ;;  %v568_v34 = vld [vmem:[%s1525_s8 + $0x110] sm:$0xff]  ;;  %v569_v35 = vld [vmem:[%s1525_s8 + $0x118] sm:$0xff] }
  0x9f   : > { %v570_v36 = vld [vmem:[%s1525_s8 + $0x120] sm:$0xff]  ;;  %696 = vst [vmem:[%s1792_s24 + $0x110] sm:$0xff] %v568_v34  ;;  %697 = vst [vmem:[%s1792_s24 + $0x118] sm:$0xff] %v569_v35  ;;  %v571_v37 = vld [vmem:[%s1525_s8 + $0x128] sm:$0xff] }
  0xa0   : > { %698 = vst [vmem:[%s1792_s24 + $0x120] sm:$0xff] %v570_v36  ;;  %v572_v38 = vld [vmem:[%s1525_s8 + $0x130] sm:$0xff]  ;;  %v573_v39 = vld [vmem:[%s1525_s8 + $0x138] sm:$0xff]  ;;  %699 = vst [vmem:[%s1792_s24 + $0x128] sm:$0xff] %v571_v37 }
  0xa1   : > { %700 = vst [vmem:[%s1792_s24 + $0x130] sm:$0xff] %v572_v38  ;;  %701 = vst [vmem:[%s1792_s24 + $0x138] sm:$0xff] %v573_v39  ;;  %v574_v40 = vld [vmem:[%s1525_s8 + $0x140] sm:$0xff]  ;;  %v575_v41 = vld [vmem:[%s1525_s8 + $0x148] sm:$0xff] }
  0xa2   : > { %v576_v42 = vld [vmem:[%s1525_s8 + $0x150] sm:$0xff]  ;;  %702 = vst [vmem:[%s1792_s24 + $0x140] sm:$0xff] %v574_v40  ;;  %703 = vst [vmem:[%s1792_s24 + $0x148] sm:$0xff] %v575_v41  ;;  %v577_v43 = vld [vmem:[%s1525_s8 + $0x158] sm:$0xff] }
  0xa3   : > { %704 = vst [vmem:[%s1792_s24 + $0x150] sm:$0xff] %v576_v42  ;;  %v578_v44 = vld [vmem:[%s1525_s8 + $0x160] sm:$0xff]  ;;  %v579_v45 = vld [vmem:[%s1525_s8 + $0x168] sm:$0xff]  ;;  %705 = vst [vmem:[%s1792_s24 + $0x158] sm:$0xff] %v577_v43 }
  0xa4   : > { %706 = vst [vmem:[%s1792_s24 + $0x160] sm:$0xff] %v578_v44  ;;  %707 = vst [vmem:[%s1792_s24 + $0x168] sm:$0xff] %v579_v45  ;;  %v580_v46 = vld [vmem:[%s1525_s8 + $0x170] sm:$0xff]  ;;  %v581_v47 = vld [vmem:[%s1525_s8 + $0x178] sm:$0xff] }
  0xa5   : > { %v582_v48 = vld [vmem:[%s1525_s8 + $0x180] sm:$0xff]  ;;  %708 = vst [vmem:[%s1792_s24 + $0x170] sm:$0xff] %v580_v46  ;;  %709 = vst [vmem:[%s1792_s24 + $0x178] sm:$0xff] %v581_v47  ;;  %v583_v49 = vld [vmem:[%s1525_s8 + $0x188] sm:$0xff] }
  0xa6   : > { %710 = vst [vmem:[%s1792_s24 + $0x180] sm:$0xff] %v582_v48  ;;  %v584_v50 = vld [vmem:[%s1525_s8 + $0x190] sm:$0xff]  ;;  %v585_v51 = vld [vmem:[%s1525_s8 + $0x198] sm:$0xff]  ;;  %711 = vst [vmem:[%s1792_s24 + $0x188] sm:$0xff] %v583_v49 }
  0xa7   : > { %712 = vst [vmem:[%s1792_s24 + $0x190] sm:$0xff] %v584_v50  ;;  %713 = vst [vmem:[%s1792_s24 + $0x198] sm:$0xff] %v585_v51  ;;  %v586_v52 = vld [vmem:[%s1525_s8 + $0x1a0] sm:$0xff]  ;;  %v587_v53 = vld [vmem:[%s1525_s8 + $0x1a8] sm:$0xff] }
  0xa8   : > { %v588_v54 = vld [vmem:[%s1525_s8 + $0x1b0] sm:$0xff]  ;;  %714 = vst [vmem:[%s1792_s24 + $0x1a0] sm:$0xff] %v586_v52  ;;  %715 = vst [vmem:[%s1792_s24 + $0x1a8] sm:$0xff] %v587_v53  ;;  %v589_v55 = vld [vmem:[%s1525_s8 + $0x1b8] sm:$0xff] }
  0xa9   : > { %716 = vst [vmem:[%s1792_s24 + $0x1b0] sm:$0xff] %v588_v54  ;;  %v590_v56 = vld [vmem:[%s1525_s8 + $0x1c0] sm:$0xff]  ;;  %v591_v57 = vld [vmem:[%s1525_s8 + $0x1c8] sm:$0xff]  ;;  %717 = vst [vmem:[%s1792_s24 + $0x1b8] sm:$0xff] %v589_v55 }
  0xaa   : > { %718 = vst [vmem:[%s1792_s24 + $0x1c0] sm:$0xff] %v590_v56  ;;  %719 = vst [vmem:[%s1792_s24 + $0x1c8] sm:$0xff] %v591_v57  ;;  %v592_v58 = vld [vmem:[%s1525_s8 + $0x1d0] sm:$0xff]  ;;  %v593_v59 = vld [vmem:[%s1525_s8 + $0x1d8] sm:$0xff] }
  0xab   : > { %v594_v60 = vld [vmem:[%s1525_s8 + $0x1e0] sm:$0xff]  ;;  %720 = vst [vmem:[%s1792_s24 + $0x1d0] sm:$0xff] %v592_v58  ;;  %721 = vst [vmem:[%s1792_s24 + $0x1d8] sm:$0xff] %v593_v59  ;;  %v595_v61 = vld [vmem:[%s1525_s8 + $0x1e8] sm:$0xff] }
  0xac   : > { %722 = vst [vmem:[%s1792_s24 + $0x1e0] sm:$0xff] %v594_v60  ;;  %v596_v62 = vld [vmem:[%s1525_s8 + $0x1f0] sm:$0xff]  ;;  %v597_v63 = vld [vmem:[%s1525_s8 + $0x1f8] sm:$0xff]  ;;  %723 = vst [vmem:[%s1792_s24 + $0x1e8] sm:$0xff] %v595_v61 }
  0xad   : > { %724 = vst [vmem:[%s1792_s24 + $0x1f0] sm:$0xff] %v596_v62  ;;  %725 = vst [vmem:[%s1792_s24 + $0x1f8] sm:$0xff] %v597_v63  ;;  %v598_v0 = vld [vmem:[%s1525_s8 + $0x200] sm:$0xff]  ;;  %v599_v1 = vld [vmem:[%s1525_s8 + $0x208] sm:$0xff] }
  0xae   : > { %v600_v2 = vld [vmem:[%s1525_s8 + $0x210] sm:$0xff]  ;;  %726 = vst [vmem:[%s1792_s24 + $0x200] sm:$0xff] %v598_v0  ;;  %727 = vst [vmem:[%s1792_s24 + $0x208] sm:$0xff] %v599_v1  ;;  %v601_v3 = vld [vmem:[%s1525_s8 + $0x218] sm:$0xff] }
  0xaf   : > { %728 = vst [vmem:[%s1792_s24 + $0x210] sm:$0xff] %v600_v2  ;;  %v602_v4 = vld [vmem:[%s1525_s8 + $0x220] sm:$0xff]  ;;  %v603_v5 = vld [vmem:[%s1525_s8 + $0x228] sm:$0xff]  ;;  %729 = vst [vmem:[%s1792_s24 + $0x218] sm:$0xff] %v601_v3 }
  0xb0   : > { %730 = vst [vmem:[%s1792_s24 + $0x220] sm:$0xff] %v602_v4  ;;  %731 = vst [vmem:[%s1792_s24 + $0x228] sm:$0xff] %v603_v5  ;;  %v604_v6 = vld [vmem:[%s1525_s8 + $0x230] sm:$0xff]  ;;  %v605_v7 = vld [vmem:[%s1525_s8 + $0x238] sm:$0xff] }
  0xb1   : > { %v606_v8 = vld [vmem:[%s1525_s8 + $0x240] sm:$0xff]  ;;  %732 = vst [vmem:[%s1792_s24 + $0x230] sm:$0xff] %v604_v6  ;;  %733 = vst [vmem:[%s1792_s24 + $0x238] sm:$0xff] %v605_v7  ;;  %v607_v9 = vld [vmem:[%s1525_s8 + $0x248] sm:$0xff] }
  0xb2   : > { %734 = vst [vmem:[%s1792_s24 + $0x240] sm:$0xff] %v606_v8  ;;  %v608_v10 = vld [vmem:[%s1525_s8 + $0x250] sm:$0xff]  ;;  %v609_v11 = vld [vmem:[%s1525_s8 + $0x258] sm:$0xff]  ;;  %735 = vst [vmem:[%s1792_s24 + $0x248] sm:$0xff] %v607_v9 }
  0xb3   : > { %736 = vst [vmem:[%s1792_s24 + $0x250] sm:$0xff] %v608_v10  ;;  %737 = vst [vmem:[%s1792_s24 + $0x258] sm:$0xff] %v609_v11  ;;  %v610_v12 = vld [vmem:[%s1525_s8 + $0x260] sm:$0xff]  ;;  %v611_v13 = vld [vmem:[%s1525_s8 + $0x268] sm:$0xff] }
  0xb4   : > { %v612_v14 = vld [vmem:[%s1525_s8 + $0x270] sm:$0xff]  ;;  %738 = vst [vmem:[%s1792_s24 + $0x260] sm:$0xff] %v610_v12  ;;  %739 = vst [vmem:[%s1792_s24 + $0x268] sm:$0xff] %v611_v13  ;;  %v613_v15 = vld [vmem:[%s1525_s8 + $0x278] sm:$0xff] }
  0xb5   : > { %740 = vst [vmem:[%s1792_s24 + $0x270] sm:$0xff] %v612_v14  ;;  %v614_v16 = vld [vmem:[%s1525_s8 + $0x280] sm:$0xff]  ;;  %v615_v17 = vld [vmem:[%s1525_s8 + $0x288] sm:$0xff]  ;;  %741 = vst [vmem:[%s1792_s24 + $0x278] sm:$0xff] %v613_v15 }
  0xb6   : > { %742 = vst [vmem:[%s1792_s24 + $0x280] sm:$0xff] %v614_v16  ;;  %743 = vst [vmem:[%s1792_s24 + $0x288] sm:$0xff] %v615_v17  ;;  %v616_v18 = vld [vmem:[%s1525_s8 + $0x290] sm:$0xff]  ;;  %v617_v19 = vld [vmem:[%s1525_s8 + $0x298] sm:$0xff] }
  0xb7   : > { %v618_v20 = vld [vmem:[%s1525_s8 + $0x2a0] sm:$0xff]  ;;  %744 = vst [vmem:[%s1792_s24 + $0x290] sm:$0xff] %v616_v18  ;;  %745 = vst [vmem:[%s1792_s24 + $0x298] sm:$0xff] %v617_v19  ;;  %v619_v21 = vld [vmem:[%s1525_s8 + $0x2a8] sm:$0xff] }
  0xb8   : > { %746 = vst [vmem:[%s1792_s24 + $0x2a0] sm:$0xff] %v618_v20  ;;  %v620_v22 = vld [vmem:[%s1525_s8 + $0x2b0] sm:$0xff]  ;;  %v621_v23 = vld [vmem:[%s1525_s8 + $0x2b8] sm:$0xff]  ;;  %747 = vst [vmem:[%s1792_s24 + $0x2a8] sm:$0xff] %v619_v21 }
  0xb9   : > { %748 = vst [vmem:[%s1792_s24 + $0x2b0] sm:$0xff] %v620_v22  ;;  %749 = vst [vmem:[%s1792_s24 + $0x2b8] sm:$0xff] %v621_v23  ;;  %v622_v24 = vld [vmem:[%s1525_s8 + $0x2c0] sm:$0xff]  ;;  %v623_v25 = vld [vmem:[%s1525_s8 + $0x2c8] sm:$0xff] }
  0xba   : > { %v624_v26 = vld [vmem:[%s1525_s8 + $0x2d0] sm:$0xff]  ;;  %750 = vst [vmem:[%s1792_s24 + $0x2c0] sm:$0xff] %v622_v24  ;;  %751 = vst [vmem:[%s1792_s24 + $0x2c8] sm:$0xff] %v623_v25  ;;  %v625_v27 = vld [vmem:[%s1525_s8 + $0x2d8] sm:$0xff] }
  0xbb   : > { %752 = vst [vmem:[%s1792_s24 + $0x2d0] sm:$0xff] %v624_v26  ;;  %v626_v28 = vld [vmem:[%s1525_s8 + $0x2e0] sm:$0xff]  ;;  %v627_v29 = vld [vmem:[%s1525_s8 + $0x2e8] sm:$0xff]  ;;  %753 = vst [vmem:[%s1792_s24 + $0x2d8] sm:$0xff] %v625_v27 }
  0xbc   : > { %754 = vst [vmem:[%s1792_s24 + $0x2e0] sm:$0xff] %v626_v28  ;;  %755 = vst [vmem:[%s1792_s24 + $0x2e8] sm:$0xff] %v627_v29  ;;  %v628_v30 = vld [vmem:[%s1525_s8 + $0x2f0] sm:$0xff]  ;;  %v629_v31 = vld [vmem:[%s1525_s8 + $0x2f8] sm:$0xff] }
  0xbd   : > { %v630_v32 = vld [vmem:[%s1525_s8 + $0x300] sm:$0xff]  ;;  %756 = vst [vmem:[%s1792_s24 + $0x2f0] sm:$0xff] %v628_v30  ;;  %757 = vst [vmem:[%s1792_s24 + $0x2f8] sm:$0xff] %v629_v31  ;;  %v631_v33 = vld [vmem:[%s1525_s8 + $0x308] sm:$0xff] }
  0xbe   : > { %758 = vst [vmem:[%s1792_s24 + $0x300] sm:$0xff] %v630_v32  ;;  %v632_v34 = vld [vmem:[%s1525_s8 + $0x310] sm:$0xff]  ;;  %v633_v35 = vld [vmem:[%s1525_s8 + $0x318] sm:$0xff]  ;;  %759 = vst [vmem:[%s1792_s24 + $0x308] sm:$0xff] %v631_v33 }
  0xbf   : > { %760 = vst [vmem:[%s1792_s24 + $0x310] sm:$0xff] %v632_v34  ;;  %761 = vst [vmem:[%s1792_s24 + $0x318] sm:$0xff] %v633_v35  ;;  %v634_v36 = vld [vmem:[%s1525_s8 + $0x320] sm:$0xff]  ;;  %v635_v37 = vld [vmem:[%s1525_s8 + $0x328] sm:$0xff] }
  0xc0   : > { %v636_v38 = vld [vmem:[%s1525_s8 + $0x330] sm:$0xff]  ;;  %762 = vst [vmem:[%s1792_s24 + $0x320] sm:$0xff] %v634_v36  ;;  %763 = vst [vmem:[%s1792_s24 + $0x328] sm:$0xff] %v635_v37  ;;  %v637_v39 = vld [vmem:[%s1525_s8 + $0x338] sm:$0xff] }
  0xc1   : > { %764 = vst [vmem:[%s1792_s24 + $0x330] sm:$0xff] %v636_v38  ;;  %v638_v40 = vld [vmem:[%s1525_s8 + $0x340] sm:$0xff]  ;;  %v639_v41 = vld [vmem:[%s1525_s8 + $0x348] sm:$0xff]  ;;  %765 = vst [vmem:[%s1792_s24 + $0x338] sm:$0xff] %v637_v39 }
  0xc2   : > { %766 = vst [vmem:[%s1792_s24 + $0x340] sm:$0xff] %v638_v40  ;;  %767 = vst [vmem:[%s1792_s24 + $0x348] sm:$0xff] %v639_v41  ;;  %v640_v42 = vld [vmem:[%s1525_s8 + $0x350] sm:$0xff]  ;;  %v641_v43 = vld [vmem:[%s1525_s8 + $0x358] sm:$0xff] }
  0xc3   : > { %v642_v44 = vld [vmem:[%s1525_s8 + $0x360] sm:$0xff]  ;;  %768 = vst [vmem:[%s1792_s24 + $0x350] sm:$0xff] %v640_v42  ;;  %769 = vst [vmem:[%s1792_s24 + $0x358] sm:$0xff] %v641_v43  ;;  %v643_v45 = vld [vmem:[%s1525_s8 + $0x368] sm:$0xff] }
  0xc4   : > { %770 = vst [vmem:[%s1792_s24 + $0x360] sm:$0xff] %v642_v44  ;;  %v644_v46 = vld [vmem:[%s1525_s8 + $0x370] sm:$0xff]  ;;  %v645_v47 = vld [vmem:[%s1525_s8 + $0x378] sm:$0xff]  ;;  %771 = vst [vmem:[%s1792_s24 + $0x368] sm:$0xff] %v643_v45 }
  0xc5   : > { %772 = vst [vmem:[%s1792_s24 + $0x370] sm:$0xff] %v644_v46  ;;  %773 = vst [vmem:[%s1792_s24 + $0x378] sm:$0xff] %v645_v47  ;;  %v646_v48 = vld [vmem:[%s1525_s8 + $0x380] sm:$0xff]  ;;  %v647_v49 = vld [vmem:[%s1525_s8 + $0x388] sm:$0xff] }
  0xc6   : > { %v648_v50 = vld [vmem:[%s1525_s8 + $0x390] sm:$0xff]  ;;  %774 = vst [vmem:[%s1792_s24 + $0x380] sm:$0xff] %v646_v48  ;;  %775 = vst [vmem:[%s1792_s24 + $0x388] sm:$0xff] %v647_v49  ;;  %v649_v51 = vld [vmem:[%s1525_s8 + $0x398] sm:$0xff] }
  0xc7   : > { %776 = vst [vmem:[%s1792_s24 + $0x390] sm:$0xff] %v648_v50  ;;  %v650_v52 = vld [vmem:[%s1525_s8 + $0x3a0] sm:$0xff]  ;;  %v651_v53 = vld [vmem:[%s1525_s8 + $0x3a8] sm:$0xff]  ;;  %777 = vst [vmem:[%s1792_s24 + $0x398] sm:$0xff] %v649_v51 }
  0xc8   : > { %778 = vst [vmem:[%s1792_s24 + $0x3a0] sm:$0xff] %v650_v52  ;;  %779 = vst [vmem:[%s1792_s24 + $0x3a8] sm:$0xff] %v651_v53  ;;  %v652_v54 = vld [vmem:[%s1525_s8 + $0x3b0] sm:$0xff]  ;;  %v653_v55 = vld [vmem:[%s1525_s8 + $0x3b8] sm:$0xff] }
  0xc9   : > { %v654_v56 = vld [vmem:[%s1525_s8 + $0x3c0] sm:$0xff]  ;;  %780 = vst [vmem:[%s1792_s24 + $0x3b0] sm:$0xff] %v652_v54  ;;  %781 = vst [vmem:[%s1792_s24 + $0x3b8] sm:$0xff] %v653_v55  ;;  %v655_v57 = vld [vmem:[%s1525_s8 + $0x3c8] sm:$0xff] }
  0xca   : > { %782 = vst [vmem:[%s1792_s24 + $0x3c0] sm:$0xff] %v654_v56  ;;  %v656_v58 = vld [vmem:[%s1525_s8 + $0x3d0] sm:$0xff]  ;;  %v657_v59 = vld [vmem:[%s1525_s8 + $0x3d8] sm:$0xff]  ;;  %783 = vst [vmem:[%s1792_s24 + $0x3c8] sm:$0xff] %v655_v57 }
  0xcb   : > { %784 = vst [vmem:[%s1792_s24 + $0x3d0] sm:$0xff] %v656_v58  ;;  %785 = vst [vmem:[%s1792_s24 + $0x3d8] sm:$0xff] %v657_v59  ;;  %v658_v60 = vld [vmem:[%s1525_s8 + $0x3e0] sm:$0xff]  ;;  %v659_v61 = vld [vmem:[%s1525_s8 + $0x3e8] sm:$0xff] }
  0xcc   : > { %v660_v62 = vld [vmem:[%s1525_s8 + $0x3f0] sm:$0xff]  ;;  %786 = vst [vmem:[%s1792_s24 + $0x3e0] sm:$0xff] %v658_v60  ;;  %787 = vst [vmem:[%s1792_s24 + $0x3e8] sm:$0xff] %v659_v61  ;;  %v661_v63 = vld [vmem:[%s1525_s8 + $0x3f8] sm:$0xff] }
  0xcd   : > { %788 = vst [vmem:[%s1792_s24 + $0x3f0] sm:$0xff] %v660_v62  ;;  %789 = vst [vmem:[%s1792_s24 + $0x3f8] sm:$0xff] %v661_v63 }
  0xce   : > { %1179 = shalt.err (!%p1176_p4)
}
  0xcf   : > { %s1180_s8 = scalar_lea.hbm %s2027_s26, 16384  ;;  %s1184_s28 = scalar_lea.hbm %s2154_s2, 32768 }
  0xd0   : > { %p1181_p5 = scmp.ne.s32.totalorder %s2027_s26, %s1180_s8  ;;  %p1185_p3 = scmp.lt.s32.totalorder %s2027_s26, %s2154_s2 }
  0xd1   : > { %p1186_p1 = scmp.lt.s32.totalorder %s1184_s28, %s1180_s8 }
  0xd2   : > { %p1182_p12 = pnand %p1181_p5, %p1426_p9 }
  0xd3   : > { %p1187_p13 = por %p1186_p1, %p1185_p3 }
  0xd4   : > { %p1183_p0 = pneg %p1182_p12 }
  0xd6   : > { %p1188_p7 = pnand %p1187_p13, %p1183_p0 }
  0xd8   : > { %1191 = shalt.err (!%p1188_p7)
}
  0xd9   : > { %s1312_s0 = smov 8192   ;;  %s1313_s5 = smov 16384  }
  0xda   : > { %s1314_s25 = smov 512   ;;  %s796_s18 = scalar_lea.sflag [#allocation9], %s1511_s11 }
  0xdb   : > { %1011 = dma.vmem_to_hbm [thread:$0]  (%p1426_p9), %s2035_s21, 16384, %s2027_s26, %s791_s22, %s1312_s0, %s1313_s5, %s1314_s25  }
  0xdc   : > { %s1192_s4 = scalar_lea.vmem %s2063_s9, 16384  ;;  %s1315_s23 = smov [#allocation8]  }
  0xdd   : > { %p1193_p10 = scmp.ne.s32.totalorder %s2063_s9, %s1192_s4  ;;  %s1196_s8 = sshll.u32 %s1315_s23, 4  ;;  %s1197_s8 = int_to_ptr.vmem [resolvable:$false] %s1196_s8 }
  0xde   : > { %s1198_s29 = scalar_lea.vmem %s1197_s8, 32768  ;;  %p1199_p11 = scmp.lt.s32.totalorder %s2063_s9, %s1197_s8 }
  0xdf   : > { %p1194_p6 = pnand %p1193_p10, %p1426_p9  ;;  %p1200_p2 = scmp.lt.s32.totalorder %s1198_s29, %s1192_s4 }
  0xe1   : > { %p1195_p8 = pneg %p1194_p6  ;;  %p1201_p4 = por %p1200_p2, %p1199_p11 }
  0xe3   : > { %p1202_p5 = pnand %p1201_p4, %p1195_p8 }
  0xe5   : > { %1205 = shalt.err (!%p1202_p5)
}
  0xe6   : > { %s1206_s21 = scalar_lea.hbm %s2061_s30, 16384  ;;  %s1210_s22 = scalar_lea.hbm %s2155_s3, 32768 }
  0xe7   : > { %p1207_p12 = scmp.ne.s32.totalorder %s2061_s30, %s1206_s21  ;;  %p1211_p1 = scmp.lt.s32.totalorder %s2061_s30, %s2155_s3 }
  0xe8   : > { %p1212_p13 = scmp.lt.s32.totalorder %s1210_s22, %s1206_s21 }
  0xe9   : > { %p1208_p0 = pnand %p1207_p12, %p1426_p9 }
  0xea   : > { %p1213_p7 = por %p1212_p13, %p1211_p1 }
  0xeb   : > { %p1209_p3 = pneg %p1208_p0 }
  0xed   : > { %p1214_p10 = pnand %p1213_p7, %p1209_p3 }
  0xef   : > { %1217 = shalt.err (!%p1214_p10)
}
  0xf0   : > { %1012 = dma.vmem_to_hbm [thread:$0]  (%p1426_p9), %s2063_s9, 16384, %s2061_s30, %s796_s18, %s1312_s0, %s1313_s5, %s1314_s25  }
  0xf1 PF: > { %s846_s12 = sand.u32 1, %s1284_s15   ;;  %p2173_p6 = scmp.ne.s32.totalorder %s2165_s7, 0 }
  0xf2   : > { %p2174_p8 = scmp.ge.s32.totalorder %s1304_s20, 2  ;;  %s847_s10 = scalar_lea.sflag [#allocation4], %s846_s12 }
  0xf4   : > { %p1023_p11 = pnand %p2174_p8, %p2173_p6 }
  0xf6   : > { %p1024_p2 = pneg %p1023_p11 }
  0xf8   : > { %1263 = dma.done.wait (%p1024_p2), %s847_s10, 16384  }
  0xf9   : > { %1265 = vsyncadd (%p1024_p2), %s847_s10, 4294950912  ;;  %s856_s4 = scalar_lea.sflag [#allocation9], %s846_s12 }
  0xfa   : > { %1267 = dma.done.wait (%p1024_p2), %s856_s4, 16384  }
  0xfb   : > { %1269 = vsyncadd (%p1024_p2), %s856_s4, 4294950912  ;;  %s26_s20 = sadd.s32 1, %s1304_s20   ;;  %s2175_s6 = sld [smem:[#allocation15_spill]] }
  0xfc   : > { %p23_p4 = scmp.ge.s32.totalorder %s26_s20, 4   ;;  %s2176_s7 = sld [smem:[#allocation14_spill]] }
  0xfd   : > { %s2177_s12 = smov %s1276_s13  ;;  %s2178_s13 = smov %s1280_s14 }
  0xfe   : > { %s2179_s14 = smov %s1472_s27  ;;  %s2180_s15 = smov %s1288_s16 }
  0xff   : > { %s2181_s16 = smov %s1292_s17  ;;  %s2183_s18 = smov %s1300_s19 }
 0x100   :  { %25 = sbr.rel (!%p23_p4) target bundleno = 14 (0xe), region = 103 }
 0x101   : > { %s2182_s17 = smov %s2175_s6 }
 0x102   : > { %s2184_s19 = smov %s2176_s7 }
 0x105   :  { %861 = vsyncpa [#allocation3], 1 }
 0x106   :  { %863 = vsyncpa [#allocation3 + $0x1], 1 }
 0x107   :  { %864 = vsyncpa [#allocation6], 1 }
 0x108   :  { %866 = vsyncpa [#allocation6 + $0x1], 1 }
 0x109   :  { %867 = vsyncpa [#allocation4], 1 }
 0x10a   :  { %869 = vsyncpa [#allocation4 + $0x1], 1 }
 0x10b   :  { %870 = vsyncpa [#allocation9], 1 }
 0x10c   :  { %872 = vsyncpa [#allocation9 + $0x1], 1 }

</bundles_post_ra>
